<compile_context>
chip_gen: v5e
topology: v5e:2x2
jax: 0.10.0
libtpu: 0.0.40
codegen_flags: <defaults>
</compile_context>

<pallas_src>
import functools
import math

import jax
import jax.numpy as jnp
from jax.experimental import pallas as pl
from jax.experimental.pallas import tpu as pltpu

_LANE = 128
_SUB = 32   # sublane rounding that covers f32(8)/bf16(16)/int8-fp8(32) native tiles


def _label_smoothing_kernel(x_ref, tgt_ref, out_ref, acc_ref, *,
                            n_rows, v_cols, padding_idx, confidence,
                            smooth_val, h_const, ragged_v):
    i = pl.program_id(0)            # row-tile index  ("parallel")
    j = pl.program_id(1)            # vocab-tile index ("arbitrary", innermost)
    nv = pl.num_programs(1)
    tm, tv = x_ref.shape

    @pl.when(j == 0)
    def _():
        acc_ref[...] = jnp.zeros_like(acc_ref)

    tgt = tgt_ref[...]                                                 # (tm, 1) int32
    # Global column ids for this vocab tile as a (1, tv) row (no (tm,tv) iota temp).
    cols = j * tv + jax.lax.broadcasted_iota(jnp.int32, (1, tv), 1)

    # Fused weights of the smoothed target distribution:
    #   confidence at the target column, smooth_val elsewhere, 0 at padding_idx.
    base = jnp.where(cols == padding_idx, jnp.float32(0.0), jnp.float32(smooth_val))
    w = jnp.where(cols == tgt, jnp.float32(confidence), base)          # (tm, tv) f32

    # x stays in its native dtype; upcast is fused into the multiply (per-vreg).
    prod = w * x_ref[...]                                              # (tm, tv) f32
    if ragged_v:
        # Last vocab tile extends past V: drop garbage lanes with a select
        # (never a multiply-by-mask -> NaN/Inf in the padding cannot propagate).
        prod = jnp.where(cols < v_cols, prod, jnp.float32(0.0))
    acc_ref[...] += jnp.sum(prod, axis=-1, keepdims=True)              # (tm, 1) f32

    @pl.when(j == nv - 1)
    def _():
        rows = i * tm + jax.lax.broadcasted_iota(jnp.int32, (tm, 1), 0)
        valid = jnp.logical_and(tgt != padding_idx, rows < n_rows)
        row_loss = jnp.where(valid, jnp.float32(h_const) - acc_ref[...],
                             jnp.float32(0.0))
        out_ref[...] = jnp.broadcast_to(jnp.sum(row_loss), out_ref.shape)


def _vmem_limit_bytes():
    try:
        cap = int(pltpu.get_tpu_info().vmem_capacity_bytes)
    except Exception:
        cap = 64 * 1024 * 1024                        # conservative (v7x per-TC physical)
    return min((cap * 3) // 4, 96 * 1024 * 1024)      # v7x -> 48 MiB, v5e/v6e -> 96 MiB


def _auto_tiles(n, v, itemsize, vmem_limit):
    """Pick (tm, tv): row tile (multiple of 32) and vocab tile (V or multiple of 128)."""
    budget = (vmem_limit * 9) // 10                   # headroom for out blocks / misc

    def per_row_bytes(tv_lanes):
        # 2x double-buffered x block + ~2.5x (tm,tv) f32 in-kernel temporaries
        # (weights / product-select) + 2x lane-padded (tm,1) int32 target block
        # + lane-padded (tm,1) f32 accumulator scratch.
        return (2 * tv_lanes * itemsize) + (5 * tv_lanes * 4) // 2 + 3 * _LANE * 4

    v_lanes = max(pl.cdiv(v, _LANE) * _LANE, _LANE)
    n_pad = max(_SUB, pl.cdiv(n, _SUB) * _SUB)
    tm_cap = min(4096, n_pad)
    if n > _SUB:   # keep >=2 row tiles so the "parallel" axis can use both v7x cores
        tm_cap = min(tm_cap, pl.cdiv(pl.cdiv(n, 2), _SUB) * _SUB)

    # Preferred: a single vocab tile (tv == V).
    tm = (budget // per_row_bytes(v_lanes)) // _SUB * _SUB
    if tm >= _SUB:
        return int(min(tm, tm_cap)), int(v)

    # V too wide for one tile at a useful row count: tile the lane axis instead.
    tm = max(_SUB, min(tm_cap, 512))
    tv_lanes = (budget // tm - 3 * _LANE * 4) // (2 * itemsize + 10)
    tv = max(_LANE, (tv_lanes // _LANE) * _LANE)
    if tv >= v:
        tv = v
    return int(tm), int(tv)


def label_smoothing_loss(x, target, *, size, padding_idx, smoothing, tm=None, tv=None):
    """Pallas implementation of LabelSmoothing.forward (returns the scalar loss)."""
    n, v = x.shape
    assert v == size, "x.shape[1] must equal `size`"

    confidence = 1.0 - smoothing
    smooth_val = smoothing / (size - 2) if size > 2 else 0.0
    # H_const = sum_c td*log(td) for a non-padding row (0*log(0) := 0).
    h_const = 0.0
    if confidence > 0.0:
        h_const += confidence * math.log(confidence)
    if smoothing > 0.0 and smooth_val > 0.0:
        h_const += smoothing * math.log(smooth_val)

    vmem_limit = _vmem_limit_bytes()
    auto_tm, auto_tv = _auto_tiles(n, v, jnp.dtype(x.dtype).itemsize, vmem_limit)
    tm = int(auto_tm if tm is None else tm)
    tv = int(auto_tv if tv is None else tv)
    num_row_tiles = int(pl.cdiv(n, tm))
    num_v_tiles = int(pl.cdiv(v, tv))
    ragged_v = (num_v_tiles * tv) != v

    tgt2d = target.reshape(n, 1).astype(jnp.int32)

    kernel = functools.partial(
        _label_smoothing_kernel,
        n_rows=n, v_cols=v, padding_idx=int(padding_idx),
        confidence=float(confidence), smooth_val=float(smooth_val),
        h_const=float(h_const), ragged_v=bool(ragged_v))

    partials = pl.pallas_call(
        kernel,
        out_shape=jax.ShapeDtypeStruct((num_row_tiles, 8, 128), jnp.float32),
        grid_spec=pltpu.PrefetchScalarGridSpec(
            num_scalar_prefetch=0,
            grid=(num_row_tiles, num_v_tiles),
            in_specs=[
                pl.BlockSpec((tm, tv), lambda i, j: (i, j)),   # x tile (native dtype)
                pl.BlockSpec((tm, 1), lambda i, j: (i, 0)),    # target tile
            ],
            out_specs=pl.BlockSpec((1, 8, 128), lambda i, j: (i, 0, 0)),
            scratch_shapes=[pltpu.VMEM((tm, 1), jnp.float32)],  # per-row xdot accumulator
        ),
        compiler_params=pltpu.CompilerParams(
            dimension_semantics=("parallel", "arbitrary"),
            vmem_limit_bytes=int(vmem_limit)),
    )(x, tgt2d)

    return jnp.sum(partials[:, 0, 0])


def _reference_loss(x, target, *, size, padding_idx, smoothing):
    """Pure-JAX reference mirroring the PyTorch module, for verification."""
    v = x.shape[1]
    confidence = 1.0 - smoothing
    cols = jnp.arange(v)[None, :]
    tgt = target[:, None]
    td = jnp.where(cols == tgt, confidence, smoothing / (size - 2)).astype(jnp.float32)
    td = jnp.where(cols == padding_idx, 0.0, td)
    td = jnp.where(tgt == padding_idx, 0.0, td)
    pos = td > 0.0
    x32 = x.astype(jnp.float32)
    return jnp.sum(jnp.where(pos, td * (jnp.log(jnp.where(pos, td, 1.0)) - x32), 0.0))


if __name__ == "__main__":
    PADDING_IDX = 0
    SMOOTHING = 0.1

    key = jax.random.PRNGKey(0)
    k1, k2, k3, k4, k5, k6 = jax.random.split(key, 6)

    # Case 1: f32, auto tiles (>=2 row tiles for megacore), N a multiple of 8.
    SIZE1, N1 = 128, 64
    x1 = jax.nn.log_softmax(jax.random.normal(k1, (N1, SIZE1), jnp.float32), axis=-1)
    t1 = jax.random.randint(k2, (N1,), 0, SIZE1, dtype=jnp.int32)
    t1 = t1.at[3].set(PADDING_IDX).at[11].set(PADDING_IDX)   # exercise index_fill_ path
    loss1 = jax.block_until_ready(
        label_smoothing_loss(x1, t1, size=SIZE1, padding_idx=PADDING_IDX,
                             smoothing=SMOOTHING))
    ref1 = _reference_loss(x1, t1, size=SIZE1, padding_idx=PADDING_IDX,
                           smoothing=SMOOTHING)
    assert jnp.allclose(loss1, ref1, rtol=1e-5, atol=1e-5), (loss1, ref1)

    # Case 2: f32, ragged N with forced small row tile (edge-row masking).
    N2 = 40
    x2 = jax.nn.log_softmax(jax.random.normal(k3, (N2, SIZE1), jnp.float32), axis=-1)
    t2 = jax.random.randint(k4, (N2,), 0, SIZE1, dtype=jnp.int32)
    t2 = t2.at[5].set(PADDING_IDX)
    loss2 = jax.block_until_ready(
        label_smoothing_loss(x2, t2, size=SIZE1, padding_idx=PADDING_IDX,
                             smoothing=SMOOTHING, tm=16))
    ref2 = _reference_loss(x2, t2, size=SIZE1, padding_idx=PADDING_IDX,
                           smoothing=SMOOTHING)
    assert jnp.allclose(loss2, ref2, rtol=1e-5, atol=1e-5), (loss2, ref2)

    # Case 3: vocab (lane) tiling with a ragged last vocab tile (V=200, tv=128).
    SIZE3, N3 = 200, 48
    x3 = jax.nn.log_softmax(jax.random.normal(k5, (N3, SIZE3), jnp.float32), axis=-1)
    t3 = jax.random.randint(k6, (N3,), 0, SIZE3, dtype=jnp.int32)
    t3 = t3.at[0].set(PADDING_IDX).at[17].set(PADDING_IDX)
    loss3 = jax.block_until_ready(
        label_smoothing_loss(x3, t3, size=SIZE3, padding_idx=PADDING_IDX,
                             smoothing=SMOOTHING, tm=16, tv=128))
    ref3 = _reference_loss(x3, t3, size=SIZE3, padding_idx=PADDING_IDX,
                           smoothing=SMOOTHING)
    assert jnp.allclose(loss3, ref3, rtol=1e-5, atol=1e-5), (loss3, ref3)

    # Case 4: bf16 inputs streamed in native dtype (upcast fused into the multiply).
    x4 = x1.astype(jnp.bfloat16)
    loss4 = jax.block_until_ready(
        label_smoothing_loss(x4, t1, size=SIZE1, padding_idx=PADDING_IDX,
                             smoothing=SMOOTHING))
    ref4 = _reference_loss(x4, t1, size=SIZE1, padding_idx=PADDING_IDX,
                           smoothing=SMOOTHING)
    assert jnp.allclose(loss4, ref4, rtol=1e-4, atol=1e-2), (loss4, ref4)

    print("KERNEL_OK")
</pallas_src>

<mosaic_0001>
module attributes {stable_mosaic.version = 11 : i64} {
  func.func @_label_smoothing_kernel(%arg0: i32, %arg1: i32, %arg2: memref<32x128xf32, #tpu.memory_space<vmem>>, %arg3: memref<32x1xi32, #tpu.memory_space<vmem>>, %arg4: memref<1x8x128xf32, #tpu.memory_space<vmem>>, %arg5: memref<32x1xf32, #tpu.memory_space<vmem>>) attributes {dimension_semantics = [#tpu.dimension_semantics<parallel>, #tpu.dimension_semantics<arbitrary>], iteration_bounds = array<i64: 2, 1>, scalar_prefetch = 0 : i64, scratch_operands = 1 : i64, tpu.core_type = #tpu.core_type<tc>, window_params = [{transform_indices = @transform_0, window_bounds = array<i64: 32, 128>}, {transform_indices = @transform_1, window_bounds = array<i64: 32, 1>}, {transform_indices = @transform_2, window_bounds = array<i64: 1, 8, 128>}]} {
    %c0_i32 = arith.constant 0 : i32
    %0 = arith.cmpi eq, %arg1, %c0_i32 : i32
    %1 = arith.extui %0 : i1 to i32
    %c0_i32_0 = arith.constant 0 : i32
    %2 = arith.cmpi ne, %1, %c0_i32_0 : i32
    scf.if %2 {
      %cst_14 = arith.constant 0.000000e+00 : f32
      %30 = vector.broadcast %cst_14 : f32 to vector<32x1xf32>
      %c0_15 = arith.constant 0 : index
      %c0_16 = arith.constant 0 : index
      %31 = vector.load %arg5[%c0_15, %c0_16] : memref<32x1xf32, #tpu.memory_space<vmem>>, vector<32x1xf32>
      tpu.vector_store %arg5[%c0_15, %c0_16], %30 {strides = array<i32>} : memref<32x1xf32, #tpu.memory_space<vmem>>, vector<32x1xf32>,
    } else {
    }
    %c0 = arith.constant 0 : index
    %c0_1 = arith.constant 0 : index
    %3 = vector.load %arg3[%c0, %c0_1] : memref<32x1xi32, #tpu.memory_space<vmem>>, vector<32x1xi32>
    %c128_i32 = arith.constant 128 : i32
    %4 = arith.muli %arg1, %c128_i32 : i32
    %5 = tpu.iota {dimensions = array<i32: 1>} : vector<1x128xi32>
    %6 = vector.broadcast %4 : i32 to vector<1x128xi32>
    %7 = arith.addi %6, %5 : vector<1x128xi32>
    %c0_i32_2 = arith.constant 0 : i32
    %8 = vector.broadcast %c0_i32_2 : i32 to vector<1x128xi32>
    %9 = arith.cmpi eq, %7, %8 : vector<1x128xi32>
    %cst = arith.constant 0.000000e+00 : f32
    %cst_3 = arith.constant 7.93650805E-4 : f32
    %10 = vector.broadcast %cst : f32 to vector<1x128xf32>
    %11 = vector.broadcast %cst_3 : f32 to vector<1x128xf32>
    %12 = arith.select %9, %10, %11 : vector<1x128xi1>, vector<1x128xf32>
    %13 = vector.broadcast %7 : vector<1x128xi32> to vector<32x128xi32>
    %14 = vector.broadcast %3 : vector<32x1xi32> to vector<32x128xi32>
    %15 = arith.cmpi eq, %13, %14 : vector<32x128xi32>
    %cst_4 = arith.constant 0.899999976 : f32
    %16 = vector.broadcast %cst_4 : f32 to vector<32x128xf32>
    %17 = vector.shape_cast %12 : vector<1x128xf32> to vector<1x128xf32>
    %18 = vector.broadcast %17 : vector<1x128xf32> to vector<32x128xf32>
    %19 = arith.select %15, %16, %18 : vector<32x128xi1>, vector<32x128xf32>
    %c0_5 = arith.constant 0 : index
    %c0_6 = arith.constant 0 : index
    %20 = vector.load %arg2[%c0_5, %c0_6] : memref<32x128xf32, #tpu.memory_space<vmem>>, vector<32x128xf32>
    %21 = arith.mulf %19, %20 : vector<32x128xf32>
    %c0_7 = arith.constant 0 : index
    %c0_8 = arith.constant 0 : index
    %22 = vector.load %arg5[%c0_7, %c0_8] : memref<32x1xf32, #tpu.memory_space<vmem>>, vector<32x1xf32>
    %cst_9 = arith.constant dense<0.000000e+00> : vector<32xf32>
    %23 = vector.multi_reduction <add>, %21, %cst_9 [1] : vector<32x128xf32> to vector<32xf32>
    %24 = vector.shape_cast %23 : vector<32xf32> to vector<32x1xf32>
    %25 = arith.addf %22, %24 : vector<32x1xf32>
    %c0_10 = arith.constant 0 : index
    %c0_11 = arith.constant 0 : index
    %26 = vector.load %arg5[%c0_10, %c0_11] : memref<32x1xf32, #tpu.memory_space<vmem>>, vector<32x1xf32>
    tpu.vector_store %arg5[%c0_10, %c0_11], %25 {strides = array<i32>} : memref<32x1xf32, #tpu.memory_space<vmem>>, vector<32x1xf32>,
    %c0_i32_12 = arith.constant 0 : i32
    %27 = arith.cmpi eq, %arg1, %c0_i32_12 : i32
    %28 = arith.extui %27 : i1 to i32
    %c0_i32_13 = arith.constant 0 : i32
    %29 = arith.cmpi ne, %28, %c0_i32_13 : i32
    scf.if %29 {
      %c32_i32 = arith.constant 32 : i32
      %30 = arith.muli %arg0, %c32_i32 : i32
      %31 = tpu.iota {dimensions = array<i32: 0>} : vector<32x1xi32>
      %32 = vector.broadcast %30 : i32 to vector<32x1xi32>
      %33 = arith.addi %32, %31 : vector<32x1xi32>
      %c0_i32_14 = arith.constant 0 : i32
      %34 = vector.broadcast %c0_i32_14 : i32 to vector<32x1xi32>
      %35 = arith.cmpi ne, %3, %34 : vector<32x1xi32>
      %c64_i32 = arith.constant 64 : i32
      %36 = vector.broadcast %c64_i32 : i32 to vector<32x1xi32>
      %37 = arith.cmpi slt, %33, %36 : vector<32x1xi32>
      %38 = arith.andi %35, %37 : vector<32x1xi1>
      %c0_15 = arith.constant 0 : index
      %c0_16 = arith.constant 0 : index
      %39 = vector.load %arg5[%c0_15, %c0_16] : memref<32x1xf32, #tpu.memory_space<vmem>>, vector<32x1xf32>
      %cst_17 = arith.constant -0.808711171 : f32
      %40 = vector.broadcast %cst_17 : f32 to vector<32x1xf32>
      %41 = arith.subf %40, %39 : vector<32x1xf32>
      %cst_18 = arith.constant 0.000000e+00 : f32
      %42 = vector.broadcast %cst_18 : f32 to vector<32x1xf32>
      %43 = arith.select %38, %41, %42 : vector<32x1xi1>, vector<32x1xf32>
      %44 = vector.shape_cast %43 : vector<32x1xf32> to vector<1x32x1xf32>
      %cst_19 = arith.constant dense<0.000000e+00> : vector<1xf32>
      %45 = vector.multi_reduction <add>, %44, %cst_19 [1, 2] : vector<1x32x1xf32> to vector<1xf32>
      %46 = vector.shape_cast %45 : vector<1xf32> to vector<1x1x1xf32>
      %47 = vector.extract %46[0, 0, 0] : f32 from vector<1x1x1xf32>
      %48 = vector.broadcast %47 : f32 to vector<1x8x128xf32>
      %c0_20 = arith.constant 0 : index
      %c0_21 = arith.constant 0 : index
      %c0_22 = arith.constant 0 : index
      %49 = vector.load %arg4[%c0_20, %c0_21, %c0_22] : memref<1x8x128xf32, #tpu.memory_space<vmem>>, vector<1x8x128xf32>
      tpu.vector_store %arg4[%c0_20, %c0_21, %c0_22], %48 {strides = array<i32>} : memref<1x8x128xf32, #tpu.memory_space<vmem>>, vector<1x8x128xf32>,
    } else {
    }
    return
  }
  func.func @transform_0(%arg0: i32, %arg1: i32) -> (i32, i32) {
    %c0_i32 = arith.constant 0 : i32
    return %arg0, %arg1 : i32, i32
  }
  func.func @transform_1(%arg0: i32, %arg1: i32) -> (i32, i32) {
    %c0_i32 = arith.constant 0 : i32
    %c0_i32_0 = arith.constant 0 : i32
    return %arg0, %c0_i32 : i32, i32
  }
  func.func @transform_2(%arg0: i32, %arg1: i32) -> (i32, i32, i32) {
    %c0_i32 = arith.constant 0 : i32
    %c0_i32_0 = arith.constant 0 : i32
    %c0_i32_1 = arith.constant 0 : i32
    return %arg0, %c0_i32, %c0_i32_0 : i32, i32, i32
  }
}

</mosaic_0001>

<bundles_post_ra>
// kernel: tpu_custom_call.1
= control target key start
LH: loop header
LB: loop body
LE: loop exit
PB: predicated region body
PF: predicated region fallthrough
CT: control target
= control target key end

     0   :  { %7 = vsyncpa [#allocation4], 0  ;;  %s730_s0 = inlined_call_operand.vmem [shape: f32[64,128], index: 0, kind: input, shape index: {}]   ;;  %s731_s1 = inlined_call_operand.vmem [shape: s32[64,1], index: 1, kind: input, shape index: {}]   ;;  %s732_s2 = inlined_call_operand.hbm [shape: f32[2,8,128], index: 2, kind: output, shape index: {}]  }
   0x1   :  { %9 = vsyncpa [#allocation4 + $0x1], 0  ;;  %s587_s9 = smov 0   ;;  %s589_s10 = smov 0  }
   0x2   :  { %s591_s11 = smov 0   ;;  %s593_s12 = smov 0  }
   0x3   :  { %s595_s13 = smov 0   ;;  %s597_s14 = smov 0  }
   0x4 LB: > { %s412_s15 = sadd.s32 4294967295, %s567_s14   ;;  %s413_s16 = sadd.s32 4294967294, %s567_s14   ;;  %s567_s14 = sphi %s597_s14, %s15_s14   ;;  %s563_s13 = sphi %s595_s13, %s747_s13   ;;  %s559_s12 = sphi %s593_s12, %s746_s12   ;;  %s555_s11 = sphi %s591_s11, %s745_s11   ;;  %s551_s10 = sphi %s589_s10, %s744_s10   ;;  %s547_s9 = sphi %s587_s9, %s743_s9  }
   0x5   : > { %s27_s17 = sadd.s32 1, %s563_s13  ;;  %s88_s18 = sadd.s32 1, %s555_s11 }
   0x6   : > { %p29_p0 = scmp.ge.s32.totalorder %s27_s17, 2  ;;  %p98_p1 = scmp.ne.s32.totalorder %s555_s11, %s551_s10 }
   0x7   : > { %p99_p2 = scmp.eq.s32.totalorder %s412_s15, 1  ;;  %p104_p3 = scmp.ne.s32.totalorder %s551_s10, %s547_s9 }
   0x8   : > { %s749_s17 = smov (%p29_p0, %s27_s17), 0  ;;  %p105_p5 = scmp.eq.s32.totalorder %s413_s16, 1 }
   0x9   : > { %p627_p4 = por %p99_p2, %p98_p1  ;;  %s85_s20 = ssub.s32 %s563_s13, %s749_s17 }
   0xa   : > { %p416_p6 = scmp.ge.s32.totalorder %s567_s14, 1  ;;  %p86_p7 = scmp.eq.s32.totalorder %s85_s20, 0 }
   0xb   : > { %p634_p8 = por %p105_p5, %p104_p3  ;;  %p144_p9 = scmp.lt.s32.totalorder %s567_s14, 3 }
   0xc   : > { %s640_s22 = scalar_select %p86_p7, %s555_s11, %s88_s18  }
   0xd   : > { %p145_p10 = pnand %p416_p6, %p144_p9 }
   0xe   : > { %s418_s23 = sshll.u32 (!%p145_p10), %s559_s12, 2  ;;  %s422_s24 = sshll.u32 (!%p145_p10), %s559_s12, 5 }
   0xf   : > { %148 = sbr.rel (%p145_p10) target bundleno = 470 (0x1d6), region = 28  ;;  %p175_p11 = scmp.lt.s32.totalorder (!%p145_p10), %s418_s23, 7 }
  0x10   : > { %s171_s4 = sand.u32 (!%p145_p10), 1, %s551_s10   ;;  %s424_s6 = sshll.u32 (!%p145_p10), %s559_s12, 3 }
  0x11   : > { %s417_s5 = sshll.u32 (!%p145_p10), %s171_s4, 3  ;;  %s325_s15 = scalar_lea.hbm (!%p145_p10), %s732_s2, %s424_s6 }
  0x12   : > { %s173_s16 = scalar_lea.vmem (!%p145_p10), [#allocation3], %s417_s5  ;;  %s329_s20 = sshll.u32 (!%p145_p10), %s325_s15, 4  ;;  %s330_s20 = int_to_ptr.hbm [resolvable:$true] %s329_s20 }
  0x13   : > { %s327_s18 = sshll.u32 (!%p145_p10), %s173_s16, 4  ;;  %s328_s18 = int_to_ptr.vmem [resolvable:$true] %s327_s18 }
  0x14   : > { %v203_v0 = vlaneseq  ;;  %v569_v1 = vmov 0   ;;  %v267_v2 = vstv %s422_s24  ;;  %s751_s23 = smov (!%p175_p11, %s418_s23), 7  ;;  %vm193_vm12 = vcmask 7168   ;;  %s315_s24 = scalar_lea.sflag [#allocation4], %s171_s4 }
  0x15   : > { %488 = vset.pattern.permute.xlu1 %v569_v1  ;;  %487 = vset.pattern.permute.xlu0 %v569_v1  ;;  %s419_s25 = sshll.u32 %s751_s23, 3  ;;  %v570_v19 = vmov 0.0   ;;  %v571_v21 = vmov 0.0007936508  }
  0x16   : > { %v263_v3 = vshrl.u32 %v203_v0, 7  ;;  %s187_s28 = scalar_lea.vmem %s731_s1, %s419_s25  ;;  %194 = vst.msk [vmem:[#allocation2] sm:$0xff] %vm193_vm12, %v570_v19  ;;  %v204_v20 = vand.u32 127, %v203_v0  ;;  %s181_s3 = scalar_lea.vmem %s730_s0, %s419_s25 }
  0x17   : > { %v200_v11 = vld [vmem:[%s187_s28 + $0x10] sm:$0xff]  ;;  %v198_v12 = vld [vmem:[%s187_s28] sm:$0xff]  ;;  %v201_v13 = vld [vmem:[%s187_s28 + $0x18] sm:$0xff]  ;;  %195 = vst.msk [vmem:[#allocation2 + $0x8] sm:$0xff] %vm193_vm12, %v570_v19  ;;  %s503_s25 = sshra.s32 %s330_s20, 4  ;;  %s504_s25 = int_to_ptr.hbm [resolvable:$true] %s503_s25 }
  0x18   : > { %v265_v4 = vadd.s32 16, %v263_v3  ;;  %v268_v5 = vadd.s32 %v267_v2, %v263_v3  ;;  %v266_v6 = vadd.s32 24, %v263_v3  ;;  %v264_v7 = vadd.s32 8, %v263_v3  ;;  %216 = vperm.xlu1 %488, %v200_v11   ;;  %210 = vperm.xlu0 %487, %v198_v12   ;;  %v199_v14 = vld [vmem:[%s187_s28 + $0x8] sm:$0xff]  ;;  %196 = vst.msk [vmem:[#allocation2 + $0x10] sm:$0xff] %vm193_vm12, %v570_v19  ;;  %v229_v25 = vld [vmem:[%s181_s3] sm:$0xff]  ;;  %p510_p1 = scmp.lt.s32.totalorder %s504_s25, %s732_s2 }
  0x19   : > { %vm274_vm2 = vcmp.ne.s32.totalorder %v200_v11, 0  ;;  %vm272_vm3 = vcmp.ne.s32.totalorder %v198_v12, 0  ;;  %vm275_vm4 = vcmp.ne.s32.totalorder %v201_v13, 0  ;;  %vm273_vm7 = vcmp.ne.s32.totalorder %v199_v14, 0  ;;  %197 = vst.msk [vmem:[#allocation2 + $0x18] sm:$0xff] %vm193_vm12, %v570_v19  ;;  %v231_v26 = vld [vmem:[%s181_s3 + $0x10] sm:$0xff] }
  0x1a   : > { %v270_v8 = vadd.s32 %v267_v2, %v265_v4  ;;  %v271_v9 = vadd.s32 %v267_v2, %v266_v6  ;;  %v269_v10 = vadd.s32 %v267_v2, %v264_v7  ;;  %vm276_vm0 = vcmp.lt.s32.totalorder %v268_v5, 64  ;;  %v232_v33 = vld [vmem:[%s181_s3 + $0x18] sm:$0xff]  ;;  %v230_v34 = vld [vmem:[%s181_s3 + $0x8] sm:$0xff]  ;;  %s505_s26 = scalar_lea.hbm %s504_s25, 8  ;;  %s509_s28 = scalar_lea.hbm %s732_s2, 16 }
  0x1b   : > { %vm656_vm9 = vmand %vm272_vm3, %vm276_vm0  ;;  %vm207_vm13 = vcmp.eq.s32.totalorder %v204_v20, 0  ;;  %p506_p12 = scmp.ne.s32.totalorder %s504_s25, %s505_s26  ;;  %p511_p2 = scmp.lt.s32.totalorder %s509_s28, %s505_s26 }
  0x1c   : > { %vm278_vm1 = vcmp.lt.s32.totalorder %v270_v8, 64  ;;  %vm279_vm6 = vcmp.lt.s32.totalorder %v271_v9, 64  ;;  %vm277_vm8 = vcmp.lt.s32.totalorder %v269_v10, 64  ;;  %v208_v22 = vsel %vm207_vm13, 0.0, %v571_v21 }
  0x1d   : > { %vm652_vm5 = vmand %vm274_vm2, %vm278_vm1  ;;  %v237_v39 = vld [vmem:[#allocation2] sm:$0xff]  ;;  %p507_p13 = pnand %p506_p12, %p627_p4  ;;  %p512_p3 = por %p511_p2, %p510_p1 }
  0x1e   : > { %vm660_vm10 = vmand %vm275_vm4, %vm279_vm6  ;;  %v238_v46 = vld [vmem:[#allocation2 + $0x8] sm:$0xff] }
  0x1f   : > { %vm664_vm11 = vmand %vm273_vm7, %vm277_vm8  ;;  %v239_v40 = vld [vmem:[#allocation2 + $0x10] sm:$0xff]  ;;  %p508_p0 = pneg %p507_p13 }
  0x20   : > { %219 = vperm.xlu1 %488, %v201_v13   ;;  %213 = vperm.xlu0 %487, %v199_v14   ;;  %v240_v45 = vld [vmem:[#allocation2 + $0x18] sm:$0xff] }
  0x21   : > { %p513_p5 = pnand %p512_p3, %p508_p0 }
  0x8a   : > { %v217_v23 = vpop.permute.xlu1 %216  ;;  %v211_v24 = vpop.permute.xlu0 %210 }
  0x8b   : > { %vm223_vm14 = vcmp.eq.s32.totalorder %v204_v20, %v217_v23  ;;  %vm221_vm15 = vcmp.eq.s32.totalorder %v204_v20, %v211_v24 }
  0x8c   : > { %v227_v27 = vsel %vm223_vm14, 0.9, %v208_v22  ;;  %v225_v28 = vsel %vm221_vm15, 0.9, %v208_v22 }
  0x8d   : > { %v233_v29 = vmul.f32 %v229_v25, %v225_v28  ;;  %v235_v30 = vmul.f32 %v231_v26, %v227_v27 }
  0x8f   : > { %241 = vadd.xlane.f32.xlu2 %v233_v29  ;;  %245 = vadd.xlane.f32.xlu0 %v235_v30 }
  0x92   : > { %v220_v31 = vpop.permute.xlu1 %219  ;;  %v214_v32 = vpop.permute.xlu0 %213 }
  0x93   : > { %vm224_vm0 = vcmp.eq.s32.totalorder %v204_v20, %v220_v31  ;;  %vm222_vm1 = vcmp.eq.s32.totalorder %v204_v20, %v214_v32 }
  0x94   : > { %v228_v35 = vsel %vm224_vm0, 0.9, %v208_v22  ;;  %v226_v36 = vsel %vm222_vm1, 0.9, %v208_v22 }
  0x95   : > { %v236_v37 = vmul.f32 %v232_v33, %v228_v35  ;;  %v234_v38 = vmul.f32 %v230_v34, %v226_v36 }
  0x97   : > { %247 = vadd.xlane.f32.xlu1 %v236_v37  ;;  %243 = vadd.xlane.f32.xlu2 %v234_v38 }
 0x102   : > { %v242_v41 = vpop.xlane.xlu2 %241  ;;  %v246_v42 = vpop.xlane.xlu0 %245 }
 0x103   : > { %v249_v43 = vadd.f32 %v242_v41, %v237_v39  ;;  %v251_v44 = vadd.f32 %v246_v42, %v239_v40 }
 0x105   : > { %254 = vst.msk [vmem:[#allocation2] sm:$0xff] %vm193_vm12, %v249_v43 }
 0x106   : > { %256 = vst.msk [vmem:[#allocation2 + $0x10] sm:$0xff] %vm193_vm12, %v251_v44 }
 0x10a   : > { %v248_v47 = vpop.xlane.xlu1 %247  ;;  %v244_v48 = vpop.xlane.xlu2 %243 }
 0x10b   : > { %v252_v49 = vadd.f32 %v248_v47, %v240_v45  ;;  %v250_v50 = vadd.f32 %v244_v48, %v238_v46 }
 0x10c   : > { %v284_v51 = vld [vmem:[#allocation2] sm:$0xff] }
 0x10d   : > { %257 = vst.msk [vmem:[#allocation2 + $0x18] sm:$0xff] %vm193_vm12, %v252_v49  ;;  %v286_v52 = vld [vmem:[#allocation2 + $0x10] sm:$0xff]  ;;  %v288_v53 = vsub.f32 -0.8087112, %v284_v51 }
 0x10e   : > { %255 = vst.msk [vmem:[#allocation2 + $0x8] sm:$0xff] %vm193_vm12, %v250_v50  ;;  %v290_v55 = vsub.f32 -0.8087112, %v286_v52 }
 0x10f   : > { %v292_v59 = vsel %vm656_vm9, %v288_v53, 0.0 }
 0x110   : > { %v294_v61 = vsel %vm652_vm5, %v290_v55, 0.0  ;;  %v296_v62 = vsel %vm193_vm12, %v292_v59, 0.0 }
 0x111   : > { %v299_v2 = vsel %vm193_vm12, %v294_v61, 0.0 }
 0x114   : > { %v287_v54 = vld [vmem:[#allocation2 + $0x18] sm:$0xff] }
 0x115   : > { %v285_v56 = vld [vmem:[#allocation2 + $0x8] sm:$0xff]  ;;  %v291_v58 = vsub.f32 -0.8087112, %v287_v54 }
 0x116   : > { %v289_v57 = vsub.f32 -0.8087112, %v285_v56 }
 0x117   : > { %v295_v0 = vsel %vm660_vm10, %v291_v58, 0.0 }
 0x118   : > { %v293_v60 = vsel %vm664_vm11, %v289_v57, 0.0  ;;  %v301_v4 = vsel %vm193_vm12, %v295_v0, 0.0 }
 0x119   : > { %v297_v63 = vsel %vm193_vm12, %v293_v60, 0.0 }
 0x11a   : > { %v298_v1 = vadd.f32 %v297_v63, %v296_v62 }
 0x11c   : > { %v300_v3 = vadd.f32 %v299_v2, %v298_v1 }
 0x11e   : > { %v302_v5 = vadd.f32 %v301_v4, %v300_v3 }
 0x120   : > { %303 = vadd.xlane.f32.xlu2 %v302_v5 }
 0x193   : > { %v304_v6 = vpop.xlane.xlu2 %303 }
 0x194   : > { %v305_v7 = vrot.slane %v304_v6, 4 }
 0x196   : > { %v306_v8 = vadd.f32 %v305_v7, %v304_v6 }
 0x198   : > { %v307_v9 = vrot.slane %v306_v8, 2 }
 0x19a   : > { %v308_v10 = vadd.f32 %v307_v9, %v306_v8 }
 0x19c   : > { %v309_v11 = vrot.slane %v308_v10, 1 }
 0x19e   : > { %v310_v12 = vadd.f32 %v309_v11, %v308_v10 }
 0x1a0   : > { %427 = vpush %v310_v12 }
 0x1d1   : > { %s428_s23 = spop %427 }
 0x1d2   : > { %v312_v13 = vstv %s428_s23 }
 0x1d3   : > { %313 = vst [vmem:[%s173_s16] sm:$0xff] %v312_v13 }
 0x1d4   : > { %516 = shalt.err (!%p513_p5)
}
 0x1d5   : > { %429 = dma.vmem_to_hbm [thread:$0]  (%p627_p4), %s328_s18, 128, %s330_s20, %s315_s24  }
 0x1d6 PF: > { %p435_p6 = scmp.ge.s32.totalorder %s567_s14, 2  ;;  %s341_s3 = sand.u32 1, %s547_s9  }
 0x1d7   : > { %s342_s4 = scalar_lea.sflag [#allocation4], %s341_s3 }
 0x1d8   : > { %p432_p7 = pnand %p435_p6, %p634_p8 }
 0x1da   : > { %p433_p9 = pneg %p432_p7 }
 0x1dc   : > { %542 = dma.done.wait (%p433_p9), %s342_s4, 128  }
 0x1dd   : > { %544 = vsyncadd (%p433_p9), %s342_s4, 4294967168  ;;  %s15_s14 = sadd.s32 1, %s567_s14   ;;  %s743_s9 = smov %s551_s10 }
 0x1de   : > { %p12_p10 = scmp.ge.s32.totalorder %s15_s14, 4   ;;  %s744_s10 = smov %s555_s11 }
 0x1df   : > { %s745_s11 = smov %s640_s22  ;;  %s746_s12 = smov %s563_s13 }
 0x1e0   : > { %s747_s13 = smov %s749_s17  ;;  %14 = sbr.rel (!%p12_p10) target bundleno = 4 (0x4), region = 74 }
 0x1e5   :  { %348 = vsyncpa [#allocation4], 1 }
 0x1e6   :  { %350 = vsyncpa [#allocation4 + $0x1], 1 }

</bundles_post_ra>
